<compile_context>
chip_gen: v7x
topology: tpu7x:2x2x1
jax: 0.10.0
libtpu: 0.0.40
codegen_flags: <defaults>
</compile_context>

<pallas_src>
import functools

import jax
import jax.numpy as jnp
from jax.experimental import pallas as pl
from jax.experimental.pallas import tpu as pltpu


# ----------------------------------------------------------------------------
# Fused Pallas kernel
# ----------------------------------------------------------------------------

def _detr_loss_kernel(logits_ref, boxes_ref, flat_idx_ref, labels_ref, valid_ref,
                      tgt_boxes_ref, tlen_ref, out_ref, *, queries, eos_coef):
    """Fused DETR loss reductions.

    Inputs:
      logits_ref    [B*Q, K]   prediction logits (any float dtype)
      boxes_ref     [B*Q, 4]   predicted boxes, cxcywh
      flat_idx_ref  [1, Np]    matched flat query index b*Q + q (int32, padded)
      labels_ref    [1, Np]    matched target class (int32, padded)
      valid_ref     [1, Np]    1.0 for real matched pairs, 0.0 for padding
      tgt_boxes_ref [4, Np]    matched target boxes, cxcywh, lane-dense
      tlen_ref      [1, B]     number of targets per image (f32)

    SMEM output lanes:
      0: weighted-NLL sum        1: weight sum (CE denominator)
      2: cardinality error       3: matched top-1 correct count
      4: L1 box-loss sum         5: sum(1 - GIoU) over matched pairs
    """
    logits = logits_ref[...].astype(jnp.float32)             # [BQ, K]
    BQ, K = logits.shape
    B = BQ // queries
    num_classes = K - 1

    flat_idx = flat_idx_ref[...]                              # [1, Np] int32
    labels = labels_ref[...]                                  # [1, Np] int32
    valid = valid_ref[...]                                    # [1, Np] f32
    Np = flat_idx.shape[1]

    # ---- single shared pass over [BQ, K]: row max, logsumexp, argmax ----------
    k_iota = jax.lax.broadcasted_iota(jnp.int32, (BQ, K), 1)
    maxv = jnp.max(logits, axis=-1, keepdims=True)            # [BQ, 1]
    lse = maxv + jnp.log(jnp.sum(jnp.exp(logits - maxv), axis=-1, keepdims=True))
    # torch argmax picks the first occurrence of the max.
    pred = jnp.min(jnp.where(logits == maxv, k_iota, K), axis=-1, keepdims=True)

    # ---- in-kernel scatter: per-query target class from the matched pairs -----
    row_iota = jax.lax.broadcasted_iota(jnp.int32, (BQ, Np), 0)
    match_b = (row_iota == flat_idx) & (valid > 0.5)           # [BQ, Np]
    match_f = match_b.astype(jnp.float32)
    tc = num_classes + jnp.sum(jnp.where(match_b, labels - num_classes, 0),
                               axis=-1, keepdims=True)         # [BQ, 1] int32
    is_matched = jnp.sum(match_f, axis=-1, keepdims=True) > 0.0

    # ---- weighted cross-entropy: one masked pass over [BQ, K] -----------------
    # empty_weight is all-ones except eos_coef at the no-object lane -> constant.
    sel = jnp.where(k_iota == tc,
                    jnp.where(k_iota == num_classes, eos_coef, 1.0), 0.0)
    nll_sum = jnp.sum(sel * (lse - logits))
    w_sum = jnp.sum(sel)

    # ---- cardinality error (reuses the shared argmax) --------------------------
    non_empty = (pred != num_classes).astype(jnp.float32)      # [BQ, 1]
    r_ib = jax.lax.broadcasted_iota(jnp.int32, (BQ, B), 0)
    b_ib = jax.lax.broadcasted_iota(jnp.int32, (BQ, B), 1)
    in_batch = (r_ib >= b_ib * queries) & (r_ib < (b_ib + 1) * queries)
    card_pred = jnp.sum(jnp.where(in_batch, non_empty, 0.0),
                        axis=0, keepdims=True)                 # [1, B]
    tlen = tlen_ref[...].astype(jnp.float32)                   # [1, B]
    card_err = jnp.sum(jnp.abs(card_pred - tlen)) / B

    # ---- matched top-1 accuracy numerator (reuses shared argmax) ---------------
    correct = jnp.sum(jnp.where(is_matched & (pred == tc), 1.0, 0.0))

    # ---- matched boxes: in-kernel gather via the match mask, lane-dense math ---
    boxes = boxes_ref[...].astype(jnp.float32)                 # [BQ, 4] cxcywh
    scx = jnp.sum(boxes[:, 0:1] * match_f, axis=0, keepdims=True)   # [1, Np]
    scy = jnp.sum(boxes[:, 1:2] * match_f, axis=0, keepdims=True)
    sw = jnp.sum(boxes[:, 2:3] * match_f, axis=0, keepdims=True)
    sh = jnp.sum(boxes[:, 3:4] * match_f, axis=0, keepdims=True)

    tgt = tgt_boxes_ref[...].astype(jnp.float32)               # [4, Np] cxcywh
    tcx, tcy, tw, th = tgt[0:1, :], tgt[1:2, :], tgt[2:3, :], tgt[3:4, :]

    # L1 box loss
    l1 = (jnp.abs(scx - tcx) + jnp.abs(scy - tcy)
          + jnp.abs(sw - tw) + jnp.abs(sh - th))
    l1_sum = jnp.sum(l1 * valid)

    # GIoU (diagonal pairs only), eps-clamped denominators
    sx0, sy0 = scx - 0.5 * sw, scy - 0.5 * sh
    sx1, sy1 = scx + 0.5 * sw, scy + 0.5 * sh
    tx0, ty0 = tcx - 0.5 * tw, tcy - 0.5 * th
    tx1, ty1 = tcx + 0.5 * tw, tcy + 0.5 * th
    area_s = (sx1 - sx0) * (sy1 - sy0)
    area_t = (tx1 - tx0) * (ty1 - ty0)
    iw = jnp.maximum(jnp.minimum(sx1, tx1) - jnp.maximum(sx0, tx0), 0.0)
    ih = jnp.maximum(jnp.minimum(sy1, ty1) - jnp.maximum(sy0, ty0), 0.0)
    inter = iw * ih
    union = area_s + area_t - inter
    ew = jnp.maximum(jnp.maximum(sx1, tx1) - jnp.minimum(sx0, tx0), 0.0)
    eh = jnp.maximum(jnp.maximum(sy1, ty1) - jnp.minimum(sy0, ty0), 0.0)
    earea = ew * eh
    eps = 1e-7
    iou = inter / jnp.maximum(union, eps)
    giou = iou - (earea - union) / jnp.maximum(earea, eps)
    giou_sum = jnp.sum((1.0 - giou) * valid)

    # ---- scalar results: element-wise SMEM stores -------------------------------
    out_ref[0] = nll_sum
    out_ref[1] = w_sum
    out_ref[2] = card_err
    out_ref[3] = correct
    out_ref[4] = l1_sum
    out_ref[5] = giou_sum
    out_ref[6] = 0.0
    out_ref[7] = 0.0


# ----------------------------------------------------------------------------
# SetCriterion wrapper (glue in plain JAX)
# ----------------------------------------------------------------------------

class IdentityMatcher:
    """Deterministic injected matcher: query i <- target i for each image."""
    def __call__(self, outputs, targets):
        return [(jnp.arange(t['labels'].shape[0], dtype=jnp.int32),
                 jnp.arange(t['labels'].shape[0], dtype=jnp.int32))
                for t in targets]


class SetCriterion:
    def __init__(self, num_classes, matcher, weight_dict, eos_coef, losses):
        self.num_classes = num_classes
        self.matcher = matcher
        self.weight_dict = weight_dict
        self.eos_coef = eos_coef
        self.losses = losses
        # Kept for interface parity; the kernel folds this into a constant.
        empty_weight = jnp.ones((num_classes + 1,), jnp.float32)
        self.empty_weight = empty_weight.at[-1].set(eos_coef)

    def forward(self, outputs, targets):
        indices = self.matcher(outputs, targets)
        num_boxes = float(max(sum(int(t['labels'].shape[0]) for t in targets), 1))

        pred_logits = outputs['pred_logits']            # [B, Q, K]
        pred_boxes = outputs['pred_boxes']              # [B, Q, 4]
        B, Q, K = pred_logits.shape

        # Flatten matched-pair bookkeeping to tiny lane-dense vectors; the kernel
        # performs the target-class scatter and matched-query gather itself.
        flat_parts, label_parts, box_parts = [], [], []
        for b, (t, (src, tgt)) in enumerate(zip(targets, indices)):
            flat_parts.append(b * Q + src.astype(jnp.int32))
            label_parts.append(t['labels'][tgt].astype(jnp.int32))
            box_parts.append(t['boxes'][tgt].astype(jnp.float32))
        n_matched = int(sum(int(p.shape[0]) for p in flat_parts))
        if n_matched > 0:
            flat_idx = jnp.concatenate(flat_parts)                  # [N]
            m_labels = jnp.concatenate(label_parts)                 # [N]
            tgt_boxes = jnp.concatenate(box_parts, axis=0)          # [N, 4]
            valid = jnp.ones((n_matched,), jnp.float32)
        else:  # degenerate no-target batch: pad one masked dummy pair
            flat_idx = jnp.zeros((1,), jnp.int32)
            m_labels = jnp.zeros((1,), jnp.int32)
            tgt_boxes = jnp.zeros((1, 4), jnp.float32)
            valid = jnp.zeros((1,), jnp.float32)

        tlen = jnp.array([t['labels'].shape[0] for t in targets],
                         jnp.float32)[None, :]                      # [1, B]

        kernel = functools.partial(_detr_loss_kernel,
                                   queries=Q, eos_coef=float(self.eos_coef))
        vmem = pl.BlockSpec(memory_space=pltpu.MemorySpace.VMEM)
        out = pl.pallas_call(
            kernel,
            out_shape=jax.ShapeDtypeStruct((8,), jnp.float32),
            in_specs=[vmem] * 7,
            out_specs=pl.BlockSpec(memory_space=pltpu.MemorySpace.SMEM),
        )(pred_logits.reshape(B * Q, K),
          pred_boxes.reshape(B * Q, 4),
          flat_idx[None, :], m_labels[None, :], valid[None, :],
          tgt_boxes.T, tlen)

        losses = {}
        if 'labels' in self.losses:
            losses['loss_ce'] = out[0] / out[1]
            losses['class_error'] = 100.0 - 100.0 * out[3] / max(n_matched, 1)
        if 'cardinality' in self.losses:
            losses['cardinality_error'] = out[2]
        if 'boxes' in self.losses:
            losses['loss_bbox'] = out[4] / num_boxes
            losses['loss_giou'] = out[5] / num_boxes
        return losses

    __call__ = forward


# ----------------------------------------------------------------------------
# Example run
# ----------------------------------------------------------------------------

if __name__ == "__main__":
    key = jax.random.PRNGKey(0)
    num_classes = 4          # K = 5 with the no-object class
    B, Q, T = 2, 8, 3        # batch, queries, targets per image

    k1, k2, k3, k4 = jax.random.split(key, 4)
    pred_logits = jax.random.normal(k1, (B, Q, num_classes + 1), jnp.float32)
    pred_boxes = jax.nn.sigmoid(jax.random.normal(k2, (B, Q, 4), jnp.float32))

    targets = []
    for b in range(B):
        kb1, kb2 = jax.random.split(jax.random.fold_in(k3, b))
        labels = jax.random.randint(kb1, (T,), 0, num_classes, jnp.int32)
        cxcy = 0.3 + 0.4 * jax.random.uniform(kb2, (T, 2), jnp.float32)
        wh = 0.2 + 0.2 * jax.random.uniform(jax.random.fold_in(k4, b), (T, 2), jnp.float32)
        targets.append({'labels': labels, 'boxes': jnp.concatenate([cxcy, wh], axis=1)})

    criterion = SetCriterion(
        num_classes=num_classes,
        matcher=IdentityMatcher(),
        weight_dict={'loss_ce': 1.0, 'loss_bbox': 5.0, 'loss_giou': 2.0},
        eos_coef=0.1,
        losses=['labels', 'cardinality', 'boxes'],
    )

    losses = criterion({'pred_logits': pred_logits, 'pred_boxes': pred_boxes}, targets)
    losses = jax.block_until_ready(losses)
    print("KERNEL_OK")
</pallas_src>

<mosaic_0001>
module attributes {stable_mosaic.version = 11 : i64} {
  func.func @_detr_loss_kernel(%arg0: memref<16x5xf32, #tpu.memory_space<vmem>>, %arg1: memref<16x4xf32, #tpu.memory_space<vmem>>, %arg2: memref<1x6xi32, #tpu.memory_space<vmem>>, %arg3: memref<1x6xi32, #tpu.memory_space<vmem>>, %arg4: memref<1x6xf32, #tpu.memory_space<vmem>>, %arg5: memref<4x6xf32, #tpu.memory_space<vmem>>, %arg6: memref<1x2xf32, #tpu.memory_space<vmem>>, %arg7: memref<8xf32, #tpu.memory_space<smem>>) attributes {dimension_semantics = [], scalar_prefetch = 0 : i64, scratch_operands = 0 : i64, tpu.core_type = #tpu.core_type<tc>} {
    %c0 = arith.constant 0 : index
    %c0_0 = arith.constant 0 : index
    %0 = vector.load %arg0[%c0, %c0_0] : memref<16x5xf32, #tpu.memory_space<vmem>>, vector<16x5xf32>
    %c0_1 = arith.constant 0 : index
    %c0_2 = arith.constant 0 : index
    %1 = vector.load %arg2[%c0_1, %c0_2] : memref<1x6xi32, #tpu.memory_space<vmem>>, vector<1x6xi32>
    %c0_3 = arith.constant 0 : index
    %c0_4 = arith.constant 0 : index
    %2 = vector.load %arg3[%c0_3, %c0_4] : memref<1x6xi32, #tpu.memory_space<vmem>>, vector<1x6xi32>
    %c0_5 = arith.constant 0 : index
    %c0_6 = arith.constant 0 : index
    %3 = vector.load %arg4[%c0_5, %c0_6] : memref<1x6xf32, #tpu.memory_space<vmem>>, vector<1x6xf32>
    %4 = tpu.iota {dimensions = array<i32: 1>} : vector<16x5xi32>
    %cst = arith.constant dense<0xFF800000> : vector<16xf32>
    %5 = vector.multi_reduction <maximumf>, %0, %cst [1] : vector<16x5xf32> to vector<16xf32>
    %6 = vector.shape_cast %5 : vector<16xf32> to vector<16x1xf32>
    %7 = vector.broadcast %6 : vector<16x1xf32> to vector<16x5xf32>
    %8 = arith.subf %0, %7 : vector<16x5xf32>
    %9 = math.exp %8 : vector<16x5xf32>
    %cst_7 = arith.constant dense<0.000000e+00> : vector<16xf32>
    %10 = vector.multi_reduction <add>, %9, %cst_7 [1] : vector<16x5xf32> to vector<16xf32>
    %11 = vector.shape_cast %10 : vector<16xf32> to vector<16x1xf32>
    %12 = math.log %11 : vector<16x1xf32>
    %13 = arith.addf %6, %12 : vector<16x1xf32>
    %14 = vector.broadcast %6 : vector<16x1xf32> to vector<16x5xf32>
    %15 = arith.cmpf oeq, %0, %14 : vector<16x5xf32>
    %c5_i32 = arith.constant 5 : i32
    %16 = vector.broadcast %c5_i32 : i32 to vector<16x5xi32>
    %17 = arith.select %15, %4, %16 : vector<16x5xi1>, vector<16x5xi32>
    %cst_8 = arith.constant dense<2147483647> : vector<16xi32>
    %18 = vector.multi_reduction <minsi>, %17, %cst_8 [1] : vector<16x5xi32> to vector<16xi32>
    %19 = vector.shape_cast %18 : vector<16xi32> to vector<16x1xi32>
    %20 = tpu.iota {dimensions = array<i32: 0>} : vector<16x6xi32>
    %21 = vector.broadcast %1 : vector<1x6xi32> to vector<16x6xi32>
    %22 = arith.cmpi eq, %20, %21 : vector<16x6xi32>
    %cst_9 = arith.constant 5.000000e-01 : f32
    %23 = vector.broadcast %cst_9 : f32 to vector<1x6xf32>
    %24 = arith.cmpf ogt, %3, %23 : vector<1x6xf32>
    %25 = vector.broadcast %24 : vector<1x6xi1> to vector<16x6xi1>
    %26 = arith.andi %22, %25 : vector<16x6xi1>
    %27 = arith.extui %26 : vector<16x6xi1> to vector<16x6xi32>
    %28 = arith.sitofp %27 : vector<16x6xi32> to vector<16x6xf32>
    %c4_i32 = arith.constant 4 : i32
    %29 = vector.broadcast %c4_i32 : i32 to vector<1x6xi32>
    %30 = arith.subi %2, %29 : vector<1x6xi32>
    %c0_i32 = arith.constant 0 : i32
    %31 = vector.shape_cast %30 : vector<1x6xi32> to vector<1x6xi32>
    %32 = vector.broadcast %31 : vector<1x6xi32> to vector<16x6xi32>
    %33 = vector.broadcast %c0_i32 : i32 to vector<16x6xi32>
    %34 = arith.select %26, %32, %33 : vector<16x6xi1>, vector<16x6xi32>
    %cst_10 = arith.constant dense<0> : vector<16xi32>
    %35 = vector.multi_reduction <add>, %34, %cst_10 [1] : vector<16x6xi32> to vector<16xi32>
    %36 = vector.shape_cast %35 : vector<16xi32> to vector<16x1xi32>
    %c4_i32_11 = arith.constant 4 : i32
    %37 = vector.broadcast %c4_i32_11 : i32 to vector<16x1xi32>
    %38 = arith.addi %37, %36 : vector<16x1xi32>
    %cst_12 = arith.constant dense<0.000000e+00> : vector<16xf32>
    %39 = vector.multi_reduction <add>, %28, %cst_12 [1] : vector<16x6xf32> to vector<16xf32>
    %40 = vector.shape_cast %39 : vector<16xf32> to vector<16x1xf32>
    %cst_13 = arith.constant 0.000000e+00 : f32
    %41 = vector.broadcast %cst_13 : f32 to vector<16x1xf32>
    %42 = arith.cmpf ogt, %40, %41 : vector<16x1xf32>
    %43 = vector.broadcast %38 : vector<16x1xi32> to vector<16x5xi32>
    %44 = arith.cmpi eq, %4, %43 : vector<16x5xi32>
    %c4_i32_14 = arith.constant 4 : i32
    %45 = vector.broadcast %c4_i32_14 : i32 to vector<16x5xi32>
    %46 = arith.cmpi eq, %4, %45 : vector<16x5xi32>
    %cst_15 = arith.constant 1.000000e-01 : f32
    %cst_16 = arith.constant 1.000000e+00 : f32
    %47 = vector.broadcast %cst_15 : f32 to vector<16x5xf32>
    %48 = vector.broadcast %cst_16 : f32 to vector<16x5xf32>
    %49 = arith.select %46, %47, %48 : vector<16x5xi1>, vector<16x5xf32>
    %cst_17 = arith.constant 0.000000e+00 : f32
    %50 = vector.broadcast %cst_17 : f32 to vector<16x5xf32>
    %51 = arith.select %44, %49, %50 : vector<16x5xi1>, vector<16x5xf32>
    %52 = vector.broadcast %13 : vector<16x1xf32> to vector<16x5xf32>
    %53 = arith.subf %52, %0 : vector<16x5xf32>
    %54 = arith.mulf %51, %53 : vector<16x5xf32>
    %55 = vector.shape_cast %54 : vector<16x5xf32> to vector<1x16x5xf32>
    %cst_18 = arith.constant dense<0.000000e+00> : vector<1xf32>
    %56 = vector.multi_reduction <add>, %55, %cst_18 [1, 2] : vector<1x16x5xf32> to vector<1xf32>
    %57 = vector.shape_cast %56 : vector<1xf32> to vector<1x1x1xf32>
    %58 = vector.extract %57[0, 0, 0] : f32 from vector<1x1x1xf32>
    %59 = vector.shape_cast %51 : vector<16x5xf32> to vector<1x16x5xf32>
    %cst_19 = arith.constant dense<0.000000e+00> : vector<1xf32>
    %60 = vector.multi_reduction <add>, %59, %cst_19 [1, 2] : vector<1x16x5xf32> to vector<1xf32>
    %61 = vector.shape_cast %60 : vector<1xf32> to vector<1x1x1xf32>
    %62 = vector.extract %61[0, 0, 0] : f32 from vector<1x1x1xf32>
    %c4_i32_20 = arith.constant 4 : i32
    %63 = vector.broadcast %c4_i32_20 : i32 to vector<16x1xi32>
    %64 = arith.cmpi ne, %19, %63 : vector<16x1xi32>
    %65 = arith.extui %64 : vector<16x1xi1> to vector<16x1xi32>
    %66 = arith.sitofp %65 : vector<16x1xi32> to vector<16x1xf32>
    %67 = tpu.iota {dimensions = array<i32: 0>} : vector<16x2xi32>
    %68 = tpu.iota {dimensions = array<i32: 1>} : vector<16x2xi32>
    %c8_i32 = arith.constant 8 : i32
    %69 = vector.broadcast %c8_i32 : i32 to vector<16x2xi32>
    %70 = arith.muli %68, %69 : vector<16x2xi32>
    %71 = arith.cmpi sge, %67, %70 : vector<16x2xi32>
    %c1_i32 = arith.constant 1 : i32
    %72 = vector.broadcast %c1_i32 : i32 to vector<16x2xi32>
    %73 = arith.addi %68, %72 : vector<16x2xi32>
    %c8_i32_21 = arith.constant 8 : i32
    %74 = vector.broadcast %c8_i32_21 : i32 to vector<16x2xi32>
    %75 = arith.muli %73, %74 : vector<16x2xi32>
    %76 = arith.cmpi slt, %67, %75 : vector<16x2xi32>
    %77 = arith.andi %71, %76 : vector<16x2xi1>
    %cst_22 = arith.constant 0.000000e+00 : f32
    %78 = vector.shape_cast %66 : vector<16x1xf32> to vector<16x1xf32>
    %79 = vector.broadcast %78 : vector<16x1xf32> to vector<16x2xf32>
    %80 = vector.broadcast %cst_22 : f32 to vector<16x2xf32>
    %81 = arith.select %77, %79, %80 : vector<16x2xi1>, vector<16x2xf32>
    %cst_23 = arith.constant dense<0.000000e+00> : vector<2xf32>
    %82 = vector.multi_reduction <add>, %81, %cst_23 [0] : vector<16x2xf32> to vector<2xf32>
    %83 = vector.shape_cast %82 : vector<2xf32> to vector<1x2xf32>
    %c0_24 = arith.constant 0 : index
    %c0_25 = arith.constant 0 : index
    %84 = vector.load %arg6[%c0_24, %c0_25] : memref<1x2xf32, #tpu.memory_space<vmem>>, vector<1x2xf32>
    %85 = arith.subf %83, %84 : vector<1x2xf32>
    %86 = math.absf %85 : vector<1x2xf32>
    %87 = vector.shape_cast %86 : vector<1x2xf32> to vector<1x1x2xf32>
    %cst_26 = arith.constant dense<0.000000e+00> : vector<1xf32>
    %88 = vector.multi_reduction <add>, %87, %cst_26 [1, 2] : vector<1x1x2xf32> to vector<1xf32>
    %89 = vector.shape_cast %88 : vector<1xf32> to vector<1x1x1xf32>
    %90 = vector.extract %89[0, 0, 0] : f32 from vector<1x1x1xf32>
    %cst_27 = arith.constant 2.000000e+00 : f32
    %91 = arith.divf %90, %cst_27 : f32
    %92 = arith.cmpi eq, %19, %38 : vector<16x1xi32>
    %93 = arith.andi %42, %92 : vector<16x1xi1>
    %cst_28 = arith.constant 1.000000e+00 : f32
    %cst_29 = arith.constant 0.000000e+00 : f32
    %94 = vector.broadcast %cst_28 : f32 to vector<16x1xf32>
    %95 = vector.broadcast %cst_29 : f32 to vector<16x1xf32>
    %96 = arith.select %93, %94, %95 : vector<16x1xi1>, vector<16x1xf32>
    %97 = vector.shape_cast %96 : vector<16x1xf32> to vector<1x16x1xf32>
    %cst_30 = arith.constant dense<0.000000e+00> : vector<1xf32>
    %98 = vector.multi_reduction <add>, %97, %cst_30 [1, 2] : vector<1x16x1xf32> to vector<1xf32>
    %99 = vector.shape_cast %98 : vector<1xf32> to vector<1x1x1xf32>
    %100 = vector.extract %99[0, 0, 0] : f32 from vector<1x1x1xf32>
    %c0_31 = arith.constant 0 : index
    %c0_32 = arith.constant 0 : index
    %101 = vector.load %arg1[%c0_31, %c0_32] : memref<16x4xf32, #tpu.memory_space<vmem>>, vector<16x4xf32>
    %102 = vector.extract_strided_slice %101 {offsets = [0, 0], sizes = [16, 1], strides = [1, 1]} : vector<16x4xf32> to vector<16x1xf32>
    %103 = vector.broadcast %102 : vector<16x1xf32> to vector<16x6xf32>
    %104 = arith.mulf %103, %28 : vector<16x6xf32>
    %cst_33 = arith.constant dense<0.000000e+00> : vector<6xf32>
    %105 = vector.multi_reduction <add>, %104, %cst_33 [0] : vector<16x6xf32> to vector<6xf32>
    %106 = vector.shape_cast %105 : vector<6xf32> to vector<1x6xf32>
    %107 = vector.extract_strided_slice %101 {offsets = [0, 1], sizes = [16, 1], strides = [1, 1]} : vector<16x4xf32> to vector<16x1xf32>
    %108 = vector.broadcast %107 : vector<16x1xf32> to vector<16x6xf32>
    %109 = arith.mulf %108, %28 : vector<16x6xf32>
    %cst_34 = arith.constant dense<0.000000e+00> : vector<6xf32>
    %110 = vector.multi_reduction <add>, %109, %cst_34 [0] : vector<16x6xf32> to vector<6xf32>
    %111 = vector.shape_cast %110 : vector<6xf32> to vector<1x6xf32>
    %112 = vector.extract_strided_slice %101 {offsets = [0, 2], sizes = [16, 1], strides = [1, 1]} : vector<16x4xf32> to vector<16x1xf32>
    %113 = vector.broadcast %112 : vector<16x1xf32> to vector<16x6xf32>
    %114 = arith.mulf %113, %28 : vector<16x6xf32>
    %cst_35 = arith.constant dense<0.000000e+00> : vector<6xf32>
    %115 = vector.multi_reduction <add>, %114, %cst_35 [0] : vector<16x6xf32> to vector<6xf32>
    %116 = vector.shape_cast %115 : vector<6xf32> to vector<1x6xf32>
    %117 = vector.extract_strided_slice %101 {offsets = [0, 3], sizes = [16, 1], strides = [1, 1]} : vector<16x4xf32> to vector<16x1xf32>
    %118 = vector.broadcast %117 : vector<16x1xf32> to vector<16x6xf32>
    %119 = arith.mulf %118, %28 : vector<16x6xf32>
    %cst_36 = arith.constant dense<0.000000e+00> : vector<6xf32>
    %120 = vector.multi_reduction <add>, %119, %cst_36 [0] : vector<16x6xf32> to vector<6xf32>
    %121 = vector.shape_cast %120 : vector<6xf32> to vector<1x6xf32>
    %c0_37 = arith.constant 0 : index
    %c0_38 = arith.constant 0 : index
    %122 = vector.load %arg5[%c0_37, %c0_38] : memref<4x6xf32, #tpu.memory_space<vmem>>, vector<4x6xf32>
    %123 = vector.extract_strided_slice %122 {offsets = [0, 0], sizes = [1, 6], strides = [1, 1]} : vector<4x6xf32> to vector<1x6xf32>
    %124 = vector.extract_strided_slice %122 {offsets = [1, 0], sizes = [1, 6], strides = [1, 1]} : vector<4x6xf32> to vector<1x6xf32>
    %125 = vector.extract_strided_slice %122 {offsets = [2, 0], sizes = [1, 6], strides = [1, 1]} : vector<4x6xf32> to vector<1x6xf32>
    %126 = vector.extract_strided_slice %122 {offsets = [3, 0], sizes = [1, 6], strides = [1, 1]} : vector<4x6xf32> to vector<1x6xf32>
    %127 = arith.subf %106, %123 : vector<1x6xf32>
    %128 = math.absf %127 : vector<1x6xf32>
    %129 = arith.subf %111, %124 : vector<1x6xf32>
    %130 = math.absf %129 : vector<1x6xf32>
    %131 = arith.addf %128, %130 : vector<1x6xf32>
    %132 = arith.subf %116, %125 : vector<1x6xf32>
    %133 = math.absf %132 : vector<1x6xf32>
    %134 = arith.addf %131, %133 : vector<1x6xf32>
    %135 = arith.subf %121, %126 : vector<1x6xf32>
    %136 = math.absf %135 : vector<1x6xf32>
    %137 = arith.addf %134, %136 : vector<1x6xf32>
    %138 = arith.mulf %137, %3 : vector<1x6xf32>
    %139 = vector.shape_cast %138 : vector<1x6xf32> to vector<1x1x6xf32>
    %cst_39 = arith.constant dense<0.000000e+00> : vector<1xf32>
    %140 = vector.multi_reduction <add>, %139, %cst_39 [1, 2] : vector<1x1x6xf32> to vector<1xf32>
    %141 = vector.shape_cast %140 : vector<1xf32> to vector<1x1x1xf32>
    %142 = vector.extract %141[0, 0, 0] : f32 from vector<1x1x1xf32>
    %cst_40 = arith.constant 5.000000e-01 : f32
    %143 = vector.broadcast %cst_40 : f32 to vector<1x6xf32>
    %144 = arith.mulf %143, %116 : vector<1x6xf32>
    %145 = arith.subf %106, %144 : vector<1x6xf32>
    %cst_41 = arith.constant 5.000000e-01 : f32
    %146 = vector.broadcast %cst_41 : f32 to vector<1x6xf32>
    %147 = arith.mulf %146, %121 : vector<1x6xf32>
    %148 = arith.subf %111, %147 : vector<1x6xf32>
    %cst_42 = arith.constant 5.000000e-01 : f32
    %149 = vector.broadcast %cst_42 : f32 to vector<1x6xf32>
    %150 = arith.mulf %149, %116 : vector<1x6xf32>
    %151 = arith.addf %106, %150 : vector<1x6xf32>
    %cst_43 = arith.constant 5.000000e-01 : f32
    %152 = vector.broadcast %cst_43 : f32 to vector<1x6xf32>
    %153 = arith.mulf %152, %121 : vector<1x6xf32>
    %154 = arith.addf %111, %153 : vector<1x6xf32>
    %cst_44 = arith.constant 5.000000e-01 : f32
    %155 = vector.broadcast %cst_44 : f32 to vector<1x6xf32>
    %156 = arith.mulf %155, %125 : vector<1x6xf32>
    %157 = arith.subf %123, %156 : vector<1x6xf32>
    %cst_45 = arith.constant 5.000000e-01 : f32
    %158 = vector.broadcast %cst_45 : f32 to vector<1x6xf32>
    %159 = arith.mulf %158, %126 : vector<1x6xf32>
    %160 = arith.subf %124, %159 : vector<1x6xf32>
    %cst_46 = arith.constant 5.000000e-01 : f32
    %161 = vector.broadcast %cst_46 : f32 to vector<1x6xf32>
    %162 = arith.mulf %161, %125 : vector<1x6xf32>
    %163 = arith.addf %123, %162 : vector<1x6xf32>
    %cst_47 = arith.constant 5.000000e-01 : f32
    %164 = vector.broadcast %cst_47 : f32 to vector<1x6xf32>
    %165 = arith.mulf %164, %126 : vector<1x6xf32>
    %166 = arith.addf %124, %165 : vector<1x6xf32>
    %167 = arith.subf %151, %145 : vector<1x6xf32>
    %168 = arith.subf %154, %148 : vector<1x6xf32>
    %169 = arith.mulf %167, %168 : vector<1x6xf32>
    %170 = arith.subf %163, %157 : vector<1x6xf32>
    %171 = arith.subf %166, %160 : vector<1x6xf32>
    %172 = arith.mulf %170, %171 : vector<1x6xf32>
    %173 = arith.minimumf %151, %163 : vector<1x6xf32>
    %174 = arith.maximumf %145, %157 : vector<1x6xf32>
    %175 = arith.subf %173, %174 : vector<1x6xf32>
    %cst_48 = arith.constant 0.000000e+00 : f32
    %176 = vector.broadcast %cst_48 : f32 to vector<1x6xf32>
    %177 = arith.maximumf %175, %176 : vector<1x6xf32>
    %178 = arith.minimumf %154, %166 : vector<1x6xf32>
    %179 = arith.maximumf %148, %160 : vector<1x6xf32>
    %180 = arith.subf %178, %179 : vector<1x6xf32>
    %cst_49 = arith.constant 0.000000e+00 : f32
    %181 = vector.broadcast %cst_49 : f32 to vector<1x6xf32>
    %182 = arith.maximumf %180, %181 : vector<1x6xf32>
    %183 = arith.mulf %177, %182 : vector<1x6xf32>
    %184 = arith.addf %169, %172 : vector<1x6xf32>
    %185 = arith.subf %184, %183 : vector<1x6xf32>
    %186 = arith.maximumf %151, %163 : vector<1x6xf32>
    %187 = arith.minimumf %145, %157 : vector<1x6xf32>
    %188 = arith.subf %186, %187 : vector<1x6xf32>
    %cst_50 = arith.constant 0.000000e+00 : f32
    %189 = vector.broadcast %cst_50 : f32 to vector<1x6xf32>
    %190 = arith.maximumf %188, %189 : vector<1x6xf32>
    %191 = arith.maximumf %154, %166 : vector<1x6xf32>
    %192 = arith.minimumf %148, %160 : vector<1x6xf32>
    %193 = arith.subf %191, %192 : vector<1x6xf32>
    %cst_51 = arith.constant 0.000000e+00 : f32
    %194 = vector.broadcast %cst_51 : f32 to vector<1x6xf32>
    %195 = arith.maximumf %193, %194 : vector<1x6xf32>
    %196 = arith.mulf %190, %195 : vector<1x6xf32>
    %cst_52 = arith.constant 1.000000e-07 : f32
    %197 = vector.broadcast %cst_52 : f32 to vector<1x6xf32>
    %198 = arith.maximumf %185, %197 : vector<1x6xf32>
    %199 = arith.divf %183, %198 : vector<1x6xf32>
    %200 = arith.subf %196, %185 : vector<1x6xf32>
    %cst_53 = arith.constant 1.000000e-07 : f32
    %201 = vector.broadcast %cst_53 : f32 to vector<1x6xf32>
    %202 = arith.maximumf %196, %201 : vector<1x6xf32>
    %203 = arith.divf %200, %202 : vector<1x6xf32>
    %204 = arith.subf %199, %203 : vector<1x6xf32>
    %cst_54 = arith.constant 1.000000e+00 : f32
    %205 = vector.broadcast %cst_54 : f32 to vector<1x6xf32>
    %206 = arith.subf %205, %204 : vector<1x6xf32>
    %207 = arith.mulf %206, %3 : vector<1x6xf32>
    %208 = vector.shape_cast %207 : vector<1x6xf32> to vector<1x1x6xf32>
    %cst_55 = arith.constant dense<0.000000e+00> : vector<1xf32>
    %209 = vector.multi_reduction <add>, %208, %cst_55 [1, 2] : vector<1x1x6xf32> to vector<1xf32>
    %210 = vector.shape_cast %209 : vector<1xf32> to vector<1x1x1xf32>
    %211 = vector.extract %210[0, 0, 0] : f32 from vector<1x1x1xf32>
    %c0_56 = arith.constant 0 : index
    %212 = memref.load %arg7[%c0_56] : memref<8xf32, #tpu.memory_space<smem>>
    memref.store %58, %arg7[%c0_56] : memref<8xf32, #tpu.memory_space<smem>>
    %c1 = arith.constant 1 : index
    %213 = memref.load %arg7[%c1] : memref<8xf32, #tpu.memory_space<smem>>
    memref.store %62, %arg7[%c1] : memref<8xf32, #tpu.memory_space<smem>>
    %c2 = arith.constant 2 : index
    %214 = memref.load %arg7[%c2] : memref<8xf32, #tpu.memory_space<smem>>
    memref.store %91, %arg7[%c2] : memref<8xf32, #tpu.memory_space<smem>>
    %c3 = arith.constant 3 : index
    %215 = memref.load %arg7[%c3] : memref<8xf32, #tpu.memory_space<smem>>
    memref.store %100, %arg7[%c3] : memref<8xf32, #tpu.memory_space<smem>>
    %c4 = arith.constant 4 : index
    %216 = memref.load %arg7[%c4] : memref<8xf32, #tpu.memory_space<smem>>
    memref.store %142, %arg7[%c4] : memref<8xf32, #tpu.memory_space<smem>>
    %c5 = arith.constant 5 : index
    %217 = memref.load %arg7[%c5] : memref<8xf32, #tpu.memory_space<smem>>
    memref.store %211, %arg7[%c5] : memref<8xf32, #tpu.memory_space<smem>>
    %cst_57 = arith.constant 0.000000e+00 : f32
    %c6 = arith.constant 6 : index
    %218 = memref.load %arg7[%c6] : memref<8xf32, #tpu.memory_space<smem>>
    memref.store %cst_57, %arg7[%c6] : memref<8xf32, #tpu.memory_space<smem>>
    %cst_58 = arith.constant 0.000000e+00 : f32
    %c7 = arith.constant 7 : index
    %219 = memref.load %arg7[%c7] : memref<8xf32, #tpu.memory_space<smem>>
    memref.store %cst_58, %arg7[%c7] : memref<8xf32, #tpu.memory_space<smem>>
    return
  }
}

</mosaic_0001>

<bundles_post_ra>
// kernel: tpu_custom_call.1
= control target key start
LH: loop header
LB: loop body
LE: loop exit
PB: predicated region body
PF: predicated region fallthrough
CT: control target
= control target key end

     0   :  { %vm34_vm0 = vcmask 39936   ;;  %s780_s0 = inlined_call_operand.vmem [shape: f32[16,5], index: 0, kind: input, shape index: {}]   ;;  %s781_s1 = inlined_call_operand.vmem [shape: f32[16,4], index: 1, kind: input, shape index: {}]   ;;  %s782_s2 = inlined_call_operand.vmem [shape: s32[1,6], index: 2, kind: input, shape index: {}]   ;;  %s783_s3 = inlined_call_operand.vmem [shape: s32[1,6], index: 3, kind: input, shape index: {}]   ;;  %s784_s4 = inlined_call_operand.vmem [shape: f32[1,6], index: 4, kind: input, shape index: {}]   ;;  %s785_s5 = inlined_call_operand.vmem [shape: f32[4,6], index: 5, kind: input, shape index: {}]   ;;  %s786_s6 = inlined_call_operand.vmem [shape: f32[1,2], index: 6, kind: input, shape index: {}]   ;;  %s787_s7 = inlined_call_operand.hbm [shape: f32[8], index: 7, kind: output, shape index: {}]  }
   0x1   :  { %v570_v0 = vld [vmem:[%s780_s0] sm:$0xff]  ;;  %v575_v1 = vld [vmem:[%s780_s0 + $0x8] sm:$0xff] }
   0x2   :  { %12 = vsyncpa [#allocation3], 0  ;;  %v35_v2 = vsel %vm34_vm0, %v570_v0, -inf  ;;  %v38_v3 = vsel %vm34_vm0, %v575_v1, -inf  ;;  %v519_v4 = vmov 3   ;;  %v256_v5 = vld [vmem:[%s781_s1] sm:$0xff]  ;;  %v32_v6 = vlaneseq }
   0x3   :  { %36 = vmax.xlane.f32.xlu0 %v35_v2  ;;  %491 = vset.pattern.permute.xlu1 %v519_v4  ;;  %v257_v18 = vld [vmem:[%s781_s1 + $0x8] sm:$0xff]  ;;  %v520_v19 = vmov 1   ;;  %v521_v20 = vmov 2   ;;  %v522_v21 = vmov 0   ;;  %v604_v22 = vld [vmem:[%s784_s4] sm:$0x1] }
   0x4   :  { %490 = vset.pattern.permute.xlu0 %v519_v4  ;;  %v584_v7 = vand.u32 127, %v32_v6  ;;  %v606_v23 = vshrl.u32 %v32_v6, 7  ;;  %vm102_vm3 = vcmp.gt.f32.partialorder %v604_v22, 0.5  ;;  %v30_v27 = vld [vmem:[%s783_s3] sm:$0x1]  ;;  %vm122_vm8 = vcmask 48128  }
   0x5   :  { %v103_v25 = vsel %vm102_vm3, 1, %v522_v21  ;;  %v464_v30 = vld [vmem:[%s782_s2] ss:$0 sm:$0xff]  ;;  %v467_v33 = vadd.s32 4294967292, %v30_v27  ;;  %v523_v61 = vmov 0.0   ;;  %vm210_vm3 = vcmask 15360  }
   0x6   :  { %v106_v24 = vsub.s32 0, %v606_v23  ;;  %v616_v29 = vadd.s32 8, %v606_v23  ;;  %vm100_vm7 = vcmp.eq.s32.totalorder %v606_v23, %v464_v30  ;;  %s507_s22 = scalar_lea.hbm %s787_s7, 16 }
   0x7   :  { %39 = vmax.xlane.f32.xlu0 %v38_v3  ;;  %p508_p0 = scmp.ne.s32.totalorder %s787_s7, %s507_s22  ;;  %p511_p1 = scmp.lt.u32.totalorder %s507_s22, %s787_s7 }
   0x8   :  { %v107_v28 = vrot.slane %v103_v25, %v106_v24  ;;  %vm101_vm4 = vcmp.eq.s32.totalorder %v616_v29, %v464_v30  ;;  %v119_v35 = vrot.slane %v467_v33, %v106_v24 }
   0x9   :  { %p513_p2 = pnand %p511_p1, %p508_p0 }
   0xa   :  { %vm108_vm5 = vcmp.eq.s32.totalorder %v107_v28, 1 }
   0xb   :  { %vm624_vm6 = vmand %vm101_vm4, %vm108_vm5 }
   0xc   :  { %v121_v38 = vsel %vm624_vm6, %v119_v35, 0  ;;  %vm631_vm9 = vmand %vm100_vm7, %vm108_vm5  ;;  %v466_v62 = vsel %vm624_vm6, 1.0, %v523_v61  ;;  %vm161_vm6 = vcmp.eq.s32.totalorder %v584_v7, 4 }
   0xd   :  { %v136_v43 = vsel %vm122_vm8, %v121_v38, 0  ;;  %v120_v44 = vsel %vm631_vm9, %v119_v35, 0  ;;  %v154_v2 = vsel %vm122_vm8, %v466_v62, 0.0  ;;  %v465_v3 = vsel %vm631_vm9, 1.0, %v523_v61 }
   0xe   :  { %v138_v47 = vshrl.u32 %v136_v43, 16  ;;  %v123_v50 = vsel %vm122_vm8, %v120_v44, 0  ;;  %v137_v56 = vand.u32 65535, %v136_v43  ;;  %v151_v4 = vsel %vm122_vm8, %v465_v3, 0.0 }
   0xf   :  { %v125_v55 = vshrl.u32 %v123_v50, 16  ;;  %v124_v60 = vand.u32 65535, %v123_v50 }
  0x10   :  { %v140_v54 = vcvt.s32.f32 %v138_v47  ;;  %v139_v59 = vcvt.s32.f32 %v137_v56 }
  0x11   :  { %v127_v58 = vcvt.s32.f32 %v125_v55  ;;  %v126_v63 = vcvt.s32.f32 %v124_v60 }
  0x1d   :  { %318 = vperm.xlu0 %490, %v256_v5  }
  0x90   :  { %v586_v8 = vpop.xlane.xlu0 %36 }
  0x91   :  { %vm59_vm1 = vcmp.eq.f32.partialorder %v570_v0, %v586_v8  ;;  %v41_v31 = vsub.f32 %v570_v0, %v586_v8 }
  0x92   :  { %v61_v9 = vsel %vm59_vm1, %v584_v7, 5 }
  0x93   :  { %v63_v10 = vsel %vm34_vm0, %v61_v9, 2147483647  ;;  %v43_v34 = vmul.f32 1.442695, %v41_v31 }
  0x94   :  { %v592_v11 = vpop.xlane.xlu0 %39  ;;  %v65_v12 = vshra.s32 %v63_v10, 16  ;;  %v64_v37 = vand.u32 65535, %v63_v10 }
  0x95   :  { %vm60_vm2 = vcmp.eq.f32.partialorder %v575_v1, %v592_v11  ;;  %v42_v26 = vsub.f32 %v575_v1, %v592_v11 }
  0x96   :  { %v67_v13 = vcvt.s32.f32 %v65_v12  ;;  %v62_v14 = vsel %vm60_vm2, %v584_v7, 5  ;;  %v66_v41 = vcvt.s32.f32 %v64_v37 }
  0x97   :  { %v78_v15 = vsel %vm34_vm0, %v62_v14, 2147483647  ;;  %v45_v32 = vmul.f32 1.442695, %v42_v26 }
  0x98   :  { %68 = vmin.xlane.f32.xlu1 %v67_v13  ;;  %v80_v16 = vshra.s32 %v78_v15, 16  ;;  %v79_v42 = vand.u32 65535, %v78_v15 }
  0x99   :  { %495 = vpow2.f32 %v45_v32 }
  0x9a   :  { %v82_v17 = vcvt.s32.f32 %v80_v16  ;;  %497 = vpow2.f32 %v43_v34  ;;  %v81_v49 = vcvt.s32.f32 %v79_v42 }
  0x9c   :  { %83 = vmin.xlane.f32.xlu1 %v82_v17 }
  0xa3   :  { %v496_v46 = vpop.eup %495 }
  0xa4   :  { %v50_v52 = vsel %vm34_vm0, %v496_v46, 0.0  ;;  %v498_v53 = vpop.eup %497 }
  0xa5   :  { %v47_v57 = vsel %vm34_vm0, %v498_v53, 0.0 }
  0xad   :  { %322 = vperm.xlu1 %491, %v257_v18  }
  0xb1   :  { %492 = vset.pattern.permute.xlu1 %v520_v19 }
  0xb2   :  { %280 = vperm.xlu1 %492, %v256_v5  }
  0xb6   :  { %284 = vperm.xlu1 %492, %v257_v18  }
  0xba   :  { %493 = vset.pattern.permute.xlu1 %v521_v20 }
  0xbb   :  { %299 = vperm.xlu1 %493, %v256_v5  }
  0xbf   :  { %303 = vperm.xlu1 %493, %v257_v18  }
  0xc3   :  { %494 = vset.pattern.permute.xlu1 %v522_v21 }
  0xc4   :  { %260 = vperm.xlu1 %494, %v256_v5  }
  0xc8   :  { %265 = vperm.xlu1 %494, %v257_v18  }
 0x125   :  { %v635_v40 = vpop.xlane.xlu1 %68 }
 0x126   :  { %vm70_vm10 = vcmp.eq.f32.partialorder %v67_v13, %v635_v40  ;;  %v319_v13 = vpop.permute.xlu0 %318 }
 0x127   :  { %v71_v45 = vsel %vm70_vm10, %v66_v41, inf  ;;  %v325_v16 = vmul.f32 %v465_v3, %v319_v13 }
 0x128   :  { %72 = vmin.xlane.f32.xlu1 %v71_v45 }
 0x129   :  { %v641_v48 = vpop.xlane.xlu1 %83  ;;  %v327_v24 = vsel %vm122_vm8, %v325_v16, 0.0 }
 0x12a   :  { %vm85_vm11 = vcmp.eq.f32.partialorder %v82_v17, %v641_v48 }
 0x12b   :  { %v86_v51 = vsel %vm85_vm11, %v81_v49, inf }
 0x12c   :  { %87 = vmin.xlane.f32.xlu0 %v86_v51  ;;  %51 = vadd.xlane.f32.xlu1 %v50_v52 }
 0x12d   :  { %v323_v5 = vpop.permute.xlu1 %322 }
 0x12e   :  { %v326_v15 = vmul.f32 %v466_v62, %v323_v5 }
 0x130   :  { %48 = vadd.xlane.f32.xlu0 %v47_v57  ;;  %143 = vadd.xlane.f32.xlu1 %v140_v54  ;;  %v328_v19 = vsel %vm122_vm8, %v326_v15, 0.0  ;;  %v666_v57 = vld [vmem:[%s785_s5] sm:$0xf] }
 0x131   :  { %v281_v6 = vpop.permute.xlu1 %280  ;;  %v329_v28 = vadd.f32 %v328_v19, %v327_v24 }
 0x132   :  { %v287_v17 = vmul.f32 %v465_v3, %v281_v6 }
 0x133   :  { %v330_v36 = vrot.slane %v329_v28, 4 }
 0x134   :  { %130 = vadd.xlane.f32.xlu0 %v127_v58  ;;  %141 = vadd.xlane.f32.xlu1 %v139_v59  ;;  %v289_v26 = vsel %vm122_vm8, %v287_v17, 0.0  ;;  %v375_v58 = vmul.f32 0.5, %v666_v57 }
 0x135   :  { %v285_v9 = vpop.permute.xlu1 %284  ;;  %v331_v42 = vadd.f32 %v330_v36, %v329_v28 }
 0x136   :  { %v288_v18 = vmul.f32 %v466_v62, %v285_v9 }
 0x137   :  { %v332_v46 = vrot.slane %v331_v42, 2 }
 0x138   :  { %128 = vadd.xlane.f32.xlu0 %v126_v63  ;;  %155 = vadd.xlane.f32.xlu1 %v154_v2  ;;  %v290_v27 = vsel %vm122_vm8, %v288_v18, 0.0  ;;  %v377_v2 = vrot.slane %v375_v58, 2 }
 0x139   :  { %v291_v34 = vadd.f32 %v290_v27, %v289_v26  ;;  %v333_v51 = vadd.f32 %v332_v46, %v331_v42 }
 0x13a   :  { %v300_v10 = vpop.permute.xlu1 %299  ;;  %v379_v9 = vsub.f32 %v666_v57, %v377_v2 }
 0x13b   :  { %v306_v20 = vmul.f32 %v465_v3, %v300_v10  ;;  %v292_v39 = vrot.slane %v291_v34, 4  ;;  %v334_v55 = vrot.slane %v333_v51, 1  ;;  %v380_v10 = vadd.f32 %v377_v2, %v666_v57 }
 0x13c   :  { %152 = vadd.xlane.f32.xlu0 %v151_v4 }
 0x13d   :  { %v308_v30 = vsel %vm122_vm8, %v306_v20, 0.0  ;;  %v293_v44 = vadd.f32 %v292_v39, %v291_v34  ;;  %v384_v20 = vsub.f32 %v380_v10, %v379_v9 }
 0x13e   :  { %v304_v12 = vpop.permute.xlu1 %303 }
 0x13f   :  { %v307_v21 = vmul.f32 %v466_v62, %v304_v12  ;;  %v294_v49 = vrot.slane %v293_v44, 2  ;;  %v386_v28 = vrot.slane %v384_v20, 1 }
 0x141   :  { %v309_v31 = vsel %vm122_vm8, %v307_v21, 0.0  ;;  %v295_v53 = vadd.f32 %v294_v49, %v293_v44  ;;  %v202_v49 = vadd.s32 1, %v584_v7 }
 0x142   :  { %v310_v35 = vadd.f32 %v309_v31, %v308_v30 }
 0x143   :  { %v261_v14 = vpop.permute.xlu1 %260  ;;  %v296_v59 = vrot.slane %v295_v53, 1 }
 0x144   :  { %v268_v32 = vmul.f32 %v465_v3, %v261_v14  ;;  %v311_v41 = vrot.slane %v310_v35, 4 }
 0x145   :  { %v671_v3 = vadd.f32 %v296_v59, %v295_v53  ;;  %v199_v53 = vmul.u32 8, %v584_v7 }
 0x146   :  { %v270_v37 = vsel %vm122_vm8, %v268_v32, 0.0  ;;  %v312_v45 = vadd.f32 %v311_v41, %v310_v35  ;;  %v388_v41 = vmul.f32 %v386_v28, %v384_v20 }
 0x147   :  { %v266_v25 = vpop.permute.xlu1 %265  ;;  %vm699_vm12 = vcmp.ge.s32.totalorder %v606_v23, %v199_v53  ;;  %vm711_vm14 = vcmp.ge.s32.totalorder %v616_v29, %v199_v53 }
 0x148   :  { %v269_v33 = vmul.f32 %v466_v62, %v266_v25  ;;  %v313_v50 = vrot.slane %v312_v45, 2  ;;  %v669_v62 = vadd.f32 %v334_v55, %v333_v51 }
 0x14a   :  { %v271_v38 = vsel %vm122_vm8, %v269_v33, 0.0  ;;  %v314_v54 = vadd.f32 %v313_v50, %v312_v45  ;;  %v371_v5 = vmul.f32 0.5, %v669_v62 }
 0x14b   :  { %v272_v43 = vadd.f32 %v271_v38, %v270_v37 }
 0x14c   :  { %v315_v60 = vrot.slane %v314_v54, 1  ;;  %v372_v13 = vsub.f32 %v671_v3, %v371_v5  ;;  %v374_v14 = vadd.f32 %v371_v5, %v671_v3 }
 0x14d   :  { %v273_v47 = vrot.slane %v272_v43, 4 }
 0x14e   :  { %v673_v4 = vadd.f32 %v315_v60, %v314_v54  ;;  %v393_v18 = vmin.f32 %v374_v14, %v380_v10  ;;  %v394_v19 = vmax.f32 %v372_v13, %v379_v9  ;;  %v407_v21 = vmax.f32 %v374_v14, %v380_v10 }
 0x14f   :  { %v274_v52 = vadd.f32 %v273_v47, %v272_v43  ;;  %v408_v24 = vmin.f32 %v372_v13, %v379_v9  ;;  %v382_v34 = vsub.f32 %v374_v14, %v372_v13  ;;  %v203_v54 = vmul.u32 8, %v202_v49 }
 0x150   :  { %v369_v12 = vmul.f32 0.5, %v673_v4  ;;  %v395_v27 = vsub.f32 %v393_v18, %v394_v19 }
 0x151   :  { %v275_v56 = vrot.slane %v274_v52, 2  ;;  %v409_v32 = vsub.f32 %v407_v21, %v408_v24  ;;  %vm704_vm13 = vcmp.lt.s32.totalorder %v606_v23, %v203_v54  ;;  %vm717_vm1 = vcmp.lt.s32.totalorder %v616_v29, %v203_v54 }
 0x152   :  { %v396_v36 = vmax.f32 %v395_v27, 0.0  ;;  %vm206_vm2 = vmand %vm699_vm12, %vm704_vm13  ;;  %v351_v21 = vsub.f32 %v669_v62, %v666_v57  ;;  %vm243_vm12 = vcmask 7168  }
 0x153   :  { %v276_v63 = vadd.f32 %v275_v56, %v274_v52  ;;  %v410_v38 = vmax.f32 %v409_v32, 0.0  ;;  %v75_v52 = vcvt.f32.s32 %v635_v40  ;;  %v90_v56 = vcvt.f32.s32 %v641_v48  ;;  %vm207_vm4 = vmand %vm711_vm14, %vm717_vm1 }
 0x154   :  { %v398_v43 = vrot.slane %v396_v36, 1  ;;  %v345_v32 = vsub.f32 %v673_v4, %v666_v57  ;;  %vm223_vm1 = vcmask 8192  }
 0x155   :  { %v277_v6 = vrot.slane %v276_v63, 1  ;;  %v412_v45 = vrot.slane %v410_v38, 1  ;;  %v76_v60 = vshll.u32 %v75_v52, 16  ;;  %v742_v38 = vand.u32 2147483647, %v351_v21 }
 0x157   :  { %v681_v15 = vadd.f32 %v277_v6, %v276_v63  ;;  %v91_v6 = vshll.u32 %v90_v56, 16 }
 0x159   :  { %v370_v16 = vsub.f32 %v681_v15, %v369_v12  ;;  %v373_v17 = vadd.f32 %v369_v12, %v681_v15 }
 0x15b   :  { %v389_v25 = vmin.f32 %v373_v17, %v380_v10  ;;  %v390_v26 = vmax.f32 %v370_v16, %v379_v9  ;;  %v403_v30 = vmax.f32 %v373_v17, %v380_v10  ;;  %v404_v31 = vmin.f32 %v370_v16, %v379_v9 }
 0x15c   :  { %v381_v33 = vsub.f32 %v373_v17, %v370_v16  ;;  %v339_v16 = vsub.f32 %v671_v3, %v666_v57 }
 0x15d   :  { %v391_v35 = vsub.f32 %v389_v25, %v390_v26  ;;  %v405_v37 = vsub.f32 %v403_v30, %v404_v31  ;;  %v337_v31 = vsub.f32 %v681_v15, %v666_v57 }
 0x15e   :  { %v383_v39 = vmul.f32 %v382_v34, %v381_v33  ;;  %v340_v3 = vand.u32 2147483647, %v339_v16 }
 0x15f   :  { %v392_v42 = vmax.f32 %v391_v35, 0.0  ;;  %v406_v44 = vmax.f32 %v405_v37, 0.0  ;;  %v338_v4 = vand.u32 2147483647, %v337_v31 }
 0x160   :  { %v401_v47 = vadd.f32 %v388_v41, %v383_v39  ;;  %v342_v15 = vrot.slane %v340_v3, 1 }
 0x161   :  { %v685_v46 = vmul.f32 %v398_v43, %v392_v42  ;;  %v688_v50 = vmul.f32 %v412_v45, %v406_v44 }
 0x163   :  { %v691_v51 = vsub.f32 %v401_v47, %v685_v46  ;;  %v419_v55 = vmax.f32 %v688_v50, 1e-07  ;;  %v346_v47 = vand.u32 2147483647, %v345_v32 }
 0x165   :  { %v415_v59 = vmax.f32 %v691_v51, 1e-07  ;;  %499 = vrcp.f32 %v419_v55  ;;  %v418_v62 = vsub.f32 %v688_v50, %v691_v51  ;;  %v524_v55 = vmov 1.0  }
 0x166   :  { %v162_v50 = vsel %vm161_vm6, 0.1, %v524_v55 }
 0x167   :  { %501 = vrcp.f32 %v415_v59 }
 0x16f   :  { %v500_v33 = vpop.eup %499 }
 0x170   :  { %v421_v56 = vmul.f32 %v500_v33, %v418_v62 }
 0x171   :  { %v502_v37 = vpop.eup %501 }
 0x172   :  { %v417_v51 = vmul.f32 %v502_v37, %v685_v46 }
 0x1b5   :  { %v73_v58 = vpop.xlane.xlu1 %72 }
 0x1b6   :  { %v74_v63 = vcvt.f32.s32 %v73_v58 }
 0x1b8   :  { %v708_v5 = vadd.s32 %v76_v60, %v74_v63 }
 0x1b9   :  { %v52_v48 = vpop.xlane.xlu1 %51  ;;  %v88_v10 = vpop.xlane.xlu0 %87 }
 0x1ba   :  { %vm193_vm15 = vcmp.ne.s32.totalorder %v708_v5, 4  ;;  %503 = vlog2.f32 %v52_v48  ;;  %v89_v12 = vcvt.f32.s32 %v88_v10  ;;  %v344_v10 = vadd.f32 %v342_v15, %v338_v4 }
 0x1bb   :  { %v468_v13 = vsel %vm193_vm15, 1.0, %v523_v61 }
 0x1bc   :  { %v92_v14 = vadd.s32 %v91_v6, %v89_v12  ;;  %v208_v18 = vsel %vm206_vm2, %v468_v13, 0.0  ;;  %v348_v6 = vrot.slane %v346_v47, 2  ;;  %vm358_vm2 = vcmask 40960  }
 0x1bd   :  { %v144_v29 = vpop.xlane.xlu1 %143  ;;  %v49_v17 = vpop.xlane.xlu0 %48  ;;  %v211_v26 = vsel %vm210_vm3, %v208_v18, 0.0 }
 0x1be   :  { %vm194_vm5 = vcmp.ne.s32.totalorder %v92_v14, 4  ;;  %v146_v19 = vcvt.f32.s32 %v144_v29  ;;  %505 = vlog2.f32 %v49_v17 }
 0x1bf   :  { %v469_v20 = vsel %vm194_vm5, 1.0, %v523_v61 }
 0x1c0   :  { %v209_v24 = vsel %vm207_vm4, %v469_v20, 0.0  ;;  %v147_v25 = vshll.u32 %v146_v19, 16 }
 0x1c1   :  { %v212_v27 = vsel %vm210_vm3, %v209_v24, 0.0  ;;  %v142_v28 = vpop.xlane.xlu1 %141  ;;  %v131_v30 = vpop.xlane.xlu0 %130 }
 0x1c2   :  { %v213_v34 = vadd.f32 %v212_v27, %v211_v26  ;;  %v145_v35 = vcvt.f32.s32 %v142_v28  ;;  %v133_v36 = vcvt.f32.s32 %v131_v30 }
 0x1c4   :  { %v504_v39 = vpop.eup %503  ;;  %v214_v41 = vrot.slane %v213_v34, 4  ;;  %v148_v42 = vadd.s32 %v147_v25, %v145_v35  ;;  %v134_v43 = vshll.u32 %v133_v36, 16 }
 0x1c5   :  { %v56_v44 = vmul.f32 0.6931472, %v504_v39  ;;  %v129_v45 = vpop.xlane.xlu0 %128  ;;  %v156_v57 = vpop.xlane.xlu1 %155 }
 0x1c6   :  { %v150_v49 = vadd.s32 4, %v148_v42  ;;  %v132_v52 = vcvt.f32.s32 %v129_v45  ;;  %vm158_vm7 = vcmp.gt.f32.partialorder %v156_v57, 0.0  ;;  %v215_v53 = vadd.f32 %v214_v41, %v213_v34 }
 0x1c7   :  { %v58_v54 = vadd.f32 %v56_v44, %v592_v11  ;;  %v354_v11 = vrot.slane %v742_v38, 3 }
 0x1c8   :  { %v506_v58 = vpop.eup %505  ;;  %v135_v59 = vadd.s32 %v134_v43, %v132_v52  ;;  %vm238_vm8 = vcmp.eq.s32.totalorder %v92_v14, %v150_v49  ;;  %vm160_vm9 = vcmp.eq.s32.totalorder %v584_v7, %v150_v49  ;;  %v216_v60 = vrot.slane %v215_v53, 2 }
 0x1c9   :  { %v54_v63 = vmul.f32 0.6931472, %v506_v58  ;;  %vm240_vm10 = vmand %vm158_vm7, %vm238_vm8  ;;  %v153_v2 = vpop.xlane.xlu0 %152  ;;  %v166_v40 = vsub.f32 %v58_v54, %v575_v1  ;;  %v164_v9 = vsel %vm160_vm9, %v162_v50, 0.0  ;;  %v422_v1 = vsub.f32 %v417_v51, %v421_v56 }
 0x1ca   :  { %v149_v48 = vadd.s32 4, %v135_v59  ;;  %vm157_vm11 = vcmp.gt.f32.partialorder %v153_v2, 0.0  ;;  %v242_v23 = vsel %vm240_vm10, 1.0, %v523_v61  ;;  %v217_v12 = vadd.f32 %v216_v60, %v215_v53 }
 0x1cb   :  { %v57_v46 = vadd.f32 %v54_v63, %v586_v8  ;;  %v182_v13 = vsel %vm34_vm0, %v164_v9, 0.0  ;;  %v168_v29 = vmul.f32 %v166_v40, %v164_v9  ;;  %v245_v19 = vsel %vm243_vm12, %v242_v23, 0.0 }
 0x1cc   :  { %vm237_vm13 = vcmp.eq.s32.totalorder %v708_v5, %v149_v48  ;;  %vm159_vm14 = vcmp.eq.s32.totalorder %v584_v7, %v149_v48  ;;  %v218_v17 = vrot.slane %v217_v12, 1  ;;  %v220_v5 = vld [vmem:[%s786_s6] sm:$0x1]  ;;  %v350_v7 = vadd.f32 %v348_v6, %v344_v10  ;;  %s525_s6 = smov 0.0  }
 0x1cd   :  { %vm239_vm15 = vmand %vm157_vm11, %vm237_vm13  ;;  %v163_v14 = vsel %vm159_vm14, %v162_v50, 0.0  ;;  %v165_v16 = vsub.f32 %v57_v46, %v570_v0  ;;  %v423_v0 = vsub.f32 1.0, %v422_v1  ;;  %448 = sst [smem:[#allocation2 + $0x6]] %s525_s6 }
 0x1ce   :  { %v241_v18 = vsel %vm239_vm15, 1.0, %v523_v61  ;;  %v181_v8 = vsel %vm34_vm0, %v163_v14, 0.0  ;;  %v219_v25 = vadd.f32 %v218_v17, %v217_v12  ;;  %v170_v61 = vsel %vm34_vm0, %v168_v29, 0.0  ;;  %450 = sst [smem:[#allocation2 + $0x7]] %s525_s6 }
 0x1cf   :  { %v183_v20 = vadd.f32 %v182_v13, %v181_v8  ;;  %v167_v21 = vmul.f32 %v165_v16, %v163_v14  ;;  %v244_v24 = vsel %vm243_vm12, %v241_v18, 0.0  ;;  %v356_v31 = vadd.f32 %v354_v11, %v350_v7 }
 0x1d0   :  { %v246_v3 = vadd.f32 %v245_v19, %v244_v24  ;;  %v221_v27 = vsub.f32 %v219_v25, %v220_v5  ;;  %v424_v32 = vmul.f32 %v423_v0, %v604_v22 }
 0x1d1   :  { %184 = vadd.xlane.f32.xlu1 %v183_v20  ;;  %v169_v26 = vsel %vm34_vm0, %v167_v21, 0.0  ;;  %v357_v34 = vmul.f32 %v356_v31, %v604_v22 }
 0x1d2   :  { %v171_v28 = vadd.f32 %v170_v61, %v169_v26  ;;  %v222_v30 = vand.u32 2147483647, %v221_v27  ;;  %v425_v35 = vsel %vm358_vm2, %v424_v32, 0.0 }
 0x1d3   :  { %v359_v36 = vsel %vm358_vm2, %v357_v34, 0.0 }
 0x1d4   :  { %172 = vadd.xlane.f32.xlu0 %v171_v28  ;;  %v224_v33 = vsel %vm223_vm1, %v222_v30, 0.0 }
 0x1d5   :  { %247 = vadd.xlane.f32.xlu1 %v246_v3 }
 0x1d8   :  { %225 = vadd.xlane.f32.xlu0 %v224_v33 }
 0x1d9   :  { %426 = vadd.xlane.f32.xlu1 %v425_v35 }
 0x1dc   :  { %360 = vadd.xlane.f32.xlu0 %v359_v36 }
 0x25e   :  { %v185_v37 = vpop.xlane.xlu1 %184 }
 0x25f   :  { %v186_v62 = vrot.slane %v185_v37, 4 }
 0x261   :  { %v187_v38 = vadd.f32 %v186_v62, %v185_v37  ;;  %v173_v39 = vpop.xlane.xlu0 %172 }
 0x262   :  { %v174_v41 = vrot.slane %v173_v39, 4  ;;  %v248_v42 = vpop.xlane.xlu1 %247 }
 0x263   :  { %v188_v43 = vrot.slane %v187_v38, 2  ;;  %v249_v15 = vrot.slane %v248_v42, 4 }
 0x264   :  { %v175_v44 = vadd.f32 %v174_v41, %v173_v39 }
 0x265   :  { %v250_v45 = vadd.f32 %v249_v15, %v248_v42  ;;  %v226_v57 = vpop.xlane.xlu0 %225  ;;  %v189_v22 = vadd.f32 %v188_v43, %v187_v38 }
 0x266   :  { %v176_v4 = vrot.slane %v175_v44, 2  ;;  %v227_v47 = vrot.slane %v226_v57, 4  ;;  %v427_v49 = vpop.xlane.xlu1 %426 }
 0x267   :  { %v251_v52 = vrot.slane %v250_v45, 2  ;;  %v428_v53 = vrot.slane %v427_v49, 4  ;;  %v190_v56 = vrot.slane %v189_v22, 1 }
 0x268   :  { %v228_v54 = vadd.f32 %v227_v47, %v226_v57  ;;  %v177_v55 = vadd.f32 %v176_v4, %v175_v44 }
 0x269   :  { %v429_v50 = vadd.f32 %v428_v53, %v427_v49  ;;  %v361_v51 = vpop.xlane.xlu0 %360  ;;  %v252_v58 = vadd.f32 %v251_v52, %v250_v45  ;;  %v191_v9 = vadd.f32 %v190_v56, %v189_v22 }
 0x26a   :  { %v229_v59 = vrot.slane %v228_v54, 2  ;;  %v362_v60 = vrot.slane %v361_v51, 4  ;;  %v178_v63 = vrot.slane %v177_v55, 1 }
 0x26b   :  { %v430_v2 = vrot.slane %v429_v50, 2  ;;  %v253_v10 = vrot.slane %v252_v58, 1 }
 0x26c   :  { %v363_v40 = vadd.f32 %v362_v60, %v361_v51  ;;  %v179_v6 = vadd.f32 %v178_v63, %v177_v55  ;;  %v230_v11 = vadd.f32 %v229_v59, %v228_v54 }
 0x26d   :  { %v431_v48 = vadd.f32 %v430_v2, %v429_v50  ;;  %v254_v1 = vadd.f32 %v253_v10, %v252_v58 }
 0x26e   :  { %v364_v46 = vrot.slane %v363_v40, 2  ;;  %470 = vpush %v179_v6  ;;  %v231_v23 = vrot.slane %v230_v11, 1 }
 0x26f   :  { %472 = vpush %v191_v9  ;;  %v432_v14 = vrot.slane %v431_v48, 1 }
 0x270   :  { %v365_v12 = vadd.f32 %v364_v46, %v363_v40  ;;  %v232_v13 = vadd.f32 %v231_v23, %v230_v11 }
 0x271   :  { %v433_v17 = vadd.f32 %v432_v14, %v431_v48 }
 0x272   :  { %474 = vpush %v232_v13  ;;  %v366_v16 = vrot.slane %v365_v12, 1 }
 0x273   :  { %476 = vpush %v254_v1 }
 0x274   :  { %v367_v29 = vadd.f32 %v366_v16, %v365_v12 }
 0x276   :  { %478 = vpush %v367_v29 }
 0x277   :  { %480 = vpush %v433_v17 }
 0x29f   :  { %s471_s13 = spop %470 }
 0x2a0   :  { %436 = sst [smem:[#allocation2]] %s471_s13  ;;  %s473_s14 = spop %472 }
 0x2a1   :  { %438 = sst [smem:[#allocation2 + $0x1]] %s473_s14 }
 0x2a3   :  { %s475_s15 = spop %474 }
 0x2a4   :  { %s236_s16 = smul.f32 0.5, %s475_s15  ;;  %s477_s17 = spop %476 }
 0x2a5   :  { %442 = sst [smem:[#allocation2 + $0x3]] %s477_s17 }
 0x2a6   :  { %440 = sst [smem:[#allocation2 + $0x2]] %s236_s16 }
 0x2a7   :  { %s479_s18 = spop %478 }
 0x2a8   :  { %444 = sst [smem:[#allocation2 + $0x4]] %s479_s18  ;;  %s481_s19 = spop %480 }
 0x2a9   :  { %446 = sst [smem:[#allocation2 + $0x5]] %s481_s19 }
 0x2aa   :  { %516 = shalt.err (!%p513_p2)
}
 0x2ab   :  { %s526_s27 = smov [#allocation2]  }
 0x2ac   :  { %458 = dma.smem_to_hbm %s526_s27, 16, %s787_s7, [#allocation3]  }
 0x2ad   :  { %517 = dma.done.wait [#allocation3], 16  }
 0x2ae   :  { %518 = vsyncadd [#allocation3], 4294967280 }
 0x2af   :  { %462 = sfence }
 0x2b0   :  { %463 = vsyncpa [#allocation3], 1 }

</bundles_post_ra>
